<compile_context>
chip_gen: v7x
topology: tpu7x:2x2x1
jax: 0.10.0
libtpu: 0.0.40
codegen_flags: <defaults>
</compile_context>

<pallas_src>
import functools
import math

import jax
import jax.numpy as jnp
from jax.experimental import pallas as pl
from jax.experimental.pallas import tpu as pltpu

EPS = 1e-5
REDUCTION = 4   # AdaptiveAvgPool2d output size
EXPANSION = 4


def _fused_kernel(x_ref, skip_ref, mask_ref, wm_ref, scale_ref, bias_ref,
                  wc_ref, bc_ref, sp_ref, pooled_ref, *, inv_area, use_vpu_match):
    """Grid = (B, HW // t_hw): both axes parallel (tiles cover complete pool bins)."""
    # match: 1x1 conv (channel contraction) + folded eval-mode BatchNorm + ReLU.
    if use_vpu_match:
        # Tiny Cin: unrolled VPU multiply-add; avoids an underfilled MXU push.
        xf = x_ref[0].astype(jnp.float32)            # (Cin,  t_hw)
        wf = wm_ref[...].astype(jnp.float32)         # (Cout, Cin)
        m = wf[:, 0:1] * xf[0:1, :]
        for c in range(1, xf.shape[0]):              # static unroll over Cin
            m = m + wf[:, c:c + 1] * xf[c:c + 1, :]
    else:
        # bf16 x bf16 MXU matmul with f32 accumulation.
        m = jnp.dot(wm_ref[...], x_ref[0], preferred_element_type=jnp.float32)
    m = jnp.maximum(m * scale_ref[...] + bias_ref[...], 0.0)

    # ReLU(skip); upcast bf16 -> f32 right after the load (no bf16 VALU on v5e).
    sk = jnp.maximum(skip_ref[0].astype(jnp.float32), 0.0)      # (Cout, t_hw)

    # torch.cat(dim=1) + ReLU (ReLU is idempotent on the first half); stays in VMEM.
    cat = jnp.concatenate([m, sk], axis=0)                      # (C2, t_hw) f32

    # compress: width-1 1x1 conv as VPU multiply + sublane reduce; lane-dense store.
    sp = jnp.sum(cat * wc_ref[...], axis=0, keepdims=True) + bc_ref[...]
    sp_ref[0] = jax.nn.sigmoid(sp)

    # fused AdaptiveAvgPool2d: this tile covers complete bins -> one matmul with a
    # tile-invariant, VMEM-resident one-hot mask (no per-step iota, no accumulator).
    pooled = jax.lax.dot_general(cat, mask_ref[...], (((1,), (1,)), ((), ())),
                                 preferred_element_type=jnp.float32)
    pooled_ref[0, 0] = pooled * inv_area


def init_params(key, in_channels, out_channels):
    R, E = REDUCTION, EXPANSION
    C2 = 2 * out_channels
    F = C2 * R * R
    Eo = out_channels * E
    ks = jax.random.split(key, 11)
    return {
        "wm":    0.2 * jax.random.normal(ks[0], (out_channels, in_channels), jnp.float32),
        "gamma": jax.random.uniform(ks[1], (out_channels,), jnp.float32, 0.5, 1.5),
        "beta":  0.1 * jax.random.normal(ks[2], (out_channels,), jnp.float32),
        "rmean": 0.1 * jax.random.normal(ks[3], (out_channels,), jnp.float32),
        "rvar":  jax.random.uniform(ks[4], (out_channels,), jnp.float32, 0.5, 1.5),
        "wc":    0.2 * jax.random.normal(ks[5], (1, C2), jnp.float32),
        "bc":    0.1 * jax.random.normal(ks[6], (1,), jnp.float32),
        "w1":    0.1 * jax.random.normal(ks[7], (Eo, F), jnp.float32),
        "b1":    0.1 * jax.random.normal(ks[8], (Eo,), jnp.float32),
        "w2":    0.1 * jax.random.normal(ks[9], (out_channels, Eo), jnp.float32),
        "b2":    0.1 * jax.random.normal(ks[10], (out_channels,), jnp.float32),
    }


def attention_block_forward(x_nchw, skip_nchw, params):
    B, Cin, H, W = x_nchw.shape
    Cout = params["wm"].shape[0]
    C2 = 2 * Cout
    R = REDUCTION
    # TODO(synk): adaptive pooling implemented only for H, W divisible by the pool size.
    assert H % R == 0 and W % R == 0
    HW = H * W
    bin_h, bin_w = H // R, W // R
    n_bins = R * R
    strip = bin_h * W                        # pixels in one full row of pooling bins

    # ---- tile selection: bin-row-strip aligned, VMEM-budgeted --------------------
    try:
        vmem_cap = int(pltpu.get_tpu_info().vmem_capacity_bytes)
    except Exception:
        vmem_cap = 64 * 1024 * 1024          # conservative (v7x-sized) fallback
    budget = (3 * vmem_cap) // 8             # ~48 MiB on v5e/v6e, ~24 MiB on v7x

    step = strip * 128 // math.gcd(strip, 128)   # bin-aligned AND 128-lane aligned
    cands = sorted({t for t in range(step, HW, step) if HW % t == 0} | {HW})

    def footprint(t):
        n_loc_ = (t // strip) * R
        return (2 * (Cin + Cout) * t * 2     # x + skip tiles, bf16, double-buffered
                + 2 * C2 * t * 4             # f32 cat + temp headroom
                + n_loc_ * t * 4             # resident pooling mask
                + 2 * t * 4                  # sp tile, double-buffered
                + 2 * C2 * n_loc_ * 4)       # pooled tile

    fitting = [t for t in cands if footprint(t) <= budget]
    # TODO(synk): if even the smallest bin-aligned tile exceeds the budget we still
    #             take it and rely on the vmem_limit_bytes headroom below.
    t_hw = max(fitting) if fitting else cands[0]

    n_tiles = HW // t_hw
    n_loc = (t_hw // strip) * R              # complete bins produced per tile
    vmem_limit = int(min(0.9 * vmem_cap, max(2 * footprint(t_hw), 32 * 1024 * 1024)))

    # ---- host-side prep -----------------------------------------------------------
    # Free reshapes of NCHW to (B, C, H*W); streaming inputs cast to bf16 (halves HBM
    # traffic); weights/BN constants stay tiny so scale/bias/wc/bc remain f32.
    x3 = x_nchw.reshape(B, Cin, HW).astype(jnp.bfloat16)
    skip3 = skip_nchw.reshape(B, Cout, HW).astype(jnp.bfloat16)
    wm_k = params["wm"].astype(jnp.bfloat16)             # (Cout, Cin)

    # Fold BN (inference mode) into per-channel scale & bias (f32).
    scale = (params["gamma"] / jnp.sqrt(params["rvar"] + EPS)).reshape(Cout, 1)
    bias = params["beta"].reshape(Cout, 1) - params["rmean"].reshape(Cout, 1) * scale
    wc_k = params["wc"].reshape(C2, 1)                   # compress weight, per-channel
    bc_k = params["bc"].reshape(1, 1)

    # Tile-invariant one-hot pooling mask: pixel p of ANY bin-aligned tile belongs to
    # local bin (p // strip) * R + (p % W) // bin_w.  Constant-folded under jit.
    p = jnp.arange(t_hw, dtype=jnp.int32)
    local_bin = (p // strip) * R + (p % W) // bin_w
    mask_local = (local_bin[None, :] ==
                  jnp.arange(n_loc, dtype=jnp.int32)[:, None]).astype(jnp.float32)

    kernel = functools.partial(_fused_kernel,
                               inv_area=1.0 / float(bin_h * bin_w),
                               use_vpu_match=(Cin <= 16))

    sp, pooled = pl.pallas_call(
        kernel,
        out_shape=(jax.ShapeDtypeStruct((B, 1, HW), jnp.float32),
                   jax.ShapeDtypeStruct((B, n_tiles, C2, n_loc), jnp.float32)),
        grid=(B, n_tiles),
        in_specs=[
            pl.BlockSpec((1, Cin, t_hw), lambda b, j: (b, 0, j)),    # x (bf16)
            pl.BlockSpec((1, Cout, t_hw), lambda b, j: (b, 0, j)),   # skip (bf16)
            pl.BlockSpec((n_loc, t_hw), lambda b, j: (0, 0)),        # resident pool mask
            pl.BlockSpec((Cout, Cin), lambda b, j: (0, 0)),          # wm (bf16)
            pl.BlockSpec((Cout, 1), lambda b, j: (0, 0)),            # folded BN scale
            pl.BlockSpec((Cout, 1), lambda b, j: (0, 0)),            # folded BN bias
            pl.BlockSpec((C2, 1), lambda b, j: (0, 0)),              # wc
            pl.BlockSpec((1, 1), lambda b, j: (0, 0)),               # bc
        ],
        out_specs=(pl.BlockSpec((1, 1, t_hw), lambda b, j: (b, 0, j)),
                   pl.BlockSpec((1, 1, C2, n_loc), lambda b, j: (b, j, 0, 0))),
        compiler_params=pltpu.CompilerParams(
            dimension_semantics=("parallel", "parallel"),
            vmem_limit_bytes=vmem_limit),
    )(x3, skip3, mask_local, wm_k, scale, bias, wc_k, bc_k)

    # Channel-attention MLP on a few-KB tensor: plain JAX (a dedicated pallas_call
    # would cost more in launch/pipeline setup than the compute).
    # Tile j produced the contiguous global bins [j*n_loc, (j+1)*n_loc).
    pooled = pooled.transpose(0, 2, 1, 3).reshape(B, C2, n_bins)
    flat = pooled.reshape(B, C2 * n_bins)      # == PyTorch (c, i, j) flatten order
    h = jnp.maximum(flat @ params["w1"].T + params["b1"], 0.0)
    ch = jax.nn.sigmoid(h @ params["w2"].T + params["b2"])

    attn_spatial = sp.reshape(B, 1, H, W)
    attn_channel = ch.reshape(B, Cout, 1, 1)
    return attn_spatial, attn_channel


def reference_forward(x, skip, p):
    """Pure-JAX NCHW reference mirroring the PyTorch forward (BN in eval mode)."""
    B, Cin, H, W = x.shape
    Cout = p["wm"].shape[0]
    R = REDUCTION
    m = jnp.einsum("bchw,oc->bohw", x, p["wm"])
    scale = p["gamma"] / jnp.sqrt(p["rvar"] + EPS)
    bias = p["beta"] - p["rmean"] * scale
    m = m * scale[None, :, None, None] + bias[None, :, None, None]
    m = jnp.maximum(m, 0.0)
    cat = jnp.concatenate([m, skip], axis=1)
    cat = jnp.maximum(cat, 0.0)
    sp = jnp.einsum("bchw,oc->bohw", cat, p["wc"]) + p["bc"][None, :, None, None]
    sp = jax.nn.sigmoid(sp)
    pooled = cat.reshape(B, 2 * Cout, R, H // R, R, W // R).mean(axis=(3, 5))
    flat = pooled.reshape(B, -1)
    h = jnp.maximum(flat @ p["w1"].T + p["b1"], 0.0)
    ch = jax.nn.sigmoid(h @ p["w2"].T + p["b2"]).reshape(B, Cout, 1, 1)
    return sp, ch


if __name__ == "__main__":
    B, Cin, Cout, H, W = 2, 4, 8, 16, 16
    key = jax.random.PRNGKey(0)
    kx, ksk, kp = jax.random.split(key, 3)
    x = jax.random.normal(kx, (B, Cin, H, W), jnp.float32)
    skip = jax.random.normal(ksk, (B, Cout, H, W), jnp.float32)
    params = init_params(kp, Cin, Cout)

    fwd = jax.jit(attention_block_forward)
    attn_spatial, attn_channel = fwd(x, skip, params)
    attn_spatial = jax.block_until_ready(attn_spatial)
    attn_channel = jax.block_until_ready(attn_channel)

    # The kernel streams x / skip / wm in bf16, so compare against the f32 reference
    # evaluated on the bf16-rounded inputs (everything downstream is f32 in both).
    x_q = x.astype(jnp.bfloat16).astype(jnp.float32)
    skip_q = skip.astype(jnp.bfloat16).astype(jnp.float32)
    p_q = dict(params)
    p_q["wm"] = params["wm"].astype(jnp.bfloat16).astype(jnp.float32)
    sp_ref, ch_ref = reference_forward(x_q, skip_q, p_q)

    assert attn_spatial.shape == (B, 1, H, W)
    assert attn_channel.shape == (B, Cout, 1, 1)
    assert jnp.allclose(attn_spatial, sp_ref, atol=2e-3, rtol=2e-3)
    assert jnp.allclose(attn_channel, ch_ref, atol=2e-3, rtol=2e-3)
    print("KERNEL_OK")
</pallas_src>

<mosaic_0001>
module attributes {stable_mosaic.version = 11 : i64} {
  func.func @_fused_kernel(%arg0: i32, %arg1: i32, %arg2: memref<1x4x256xbf16, #tpu.memory_space<vmem>>, %arg3: memref<1x8x256xbf16, #tpu.memory_space<vmem>>, %arg4: memref<16x256xf32, #tpu.memory_space<vmem>>, %arg5: memref<8x4xbf16, #tpu.memory_space<vmem>>, %arg6: memref<8x1xf32, #tpu.memory_space<vmem>>, %arg7: memref<8x1xf32, #tpu.memory_space<vmem>>, %arg8: memref<16x1xf32, #tpu.memory_space<vmem>>, %arg9: memref<1x1xf32, #tpu.memory_space<vmem>>, %arg10: memref<1x1x256xf32, #tpu.memory_space<vmem>>, %arg11: memref<1x1x16x16xf32, #tpu.memory_space<vmem>>) attributes {dimension_semantics = [#tpu.dimension_semantics<parallel>, #tpu.dimension_semantics<parallel>], iteration_bounds = array<i64: 2, 1>, scalar_prefetch = 0 : i64, scratch_operands = 0 : i64, tpu.core_type = #tpu.core_type<tc>, window_params = [{transform_indices = @transform_0, window_bounds = array<i64: 1, 4, 256>}, {transform_indices = @transform_1, window_bounds = array<i64: 1, 8, 256>}, {pipeline_mode = #tpu.pipeline_mode<synchronous>, transform_indices = @transform_2, window_bounds = array<i64: 16, 256>}, {pipeline_mode = #tpu.pipeline_mode<synchronous>, transform_indices = @transform_3, window_bounds = array<i64: 8, 4>}, {pipeline_mode = #tpu.pipeline_mode<synchronous>, transform_indices = @transform_4, window_bounds = array<i64: 8, 1>}, {pipeline_mode = #tpu.pipeline_mode<synchronous>, transform_indices = @transform_5, window_bounds = array<i64: 8, 1>}, {pipeline_mode = #tpu.pipeline_mode<synchronous>, transform_indices = @transform_6, window_bounds = array<i64: 16, 1>}, {pipeline_mode = #tpu.pipeline_mode<synchronous>, transform_indices = @transform_7, window_bounds = array<i64: 1, 1>}, {transform_indices = @transform_8, window_bounds = array<i64: 1, 1, 256>}, {transform_indices = @transform_9, window_bounds = array<i64: 1, 1, 16, 16>}]} {
    %c0 = arith.constant 0 : index
    %c0_0 = arith.constant 0 : index
    %c0_1 = arith.constant 0 : index
    %0 = vector.load %arg2[%c0, %c0_0, %c0_1] : memref<1x4x256xbf16, #tpu.memory_space<vmem>>, vector<1x4x256xbf16>
    %1 = vector.shape_cast %0 : vector<1x4x256xbf16> to vector<4x256xbf16>
    %2 = arith.extf %1 : vector<4x256xbf16> to vector<4x256xf32>
    %c0_2 = arith.constant 0 : index
    %c0_3 = arith.constant 0 : index
    %3 = vector.load %arg5[%c0_2, %c0_3] : memref<8x4xbf16, #tpu.memory_space<vmem>>, vector<8x4xbf16>
    %4 = arith.extf %3 : vector<8x4xbf16> to vector<8x4xf32>
    %5 = vector.extract_strided_slice %4 {offsets = [0, 0], sizes = [8, 1], strides = [1, 1]} : vector<8x4xf32> to vector<8x1xf32>
    %6 = vector.extract_strided_slice %2 {offsets = [0, 0], sizes = [1, 256], strides = [1, 1]} : vector<4x256xf32> to vector<1x256xf32>
    %7 = vector.broadcast %5 : vector<8x1xf32> to vector<8x256xf32>
    %8 = vector.broadcast %6 : vector<1x256xf32> to vector<8x256xf32>
    %9 = arith.mulf %7, %8 : vector<8x256xf32>
    %10 = vector.extract_strided_slice %4 {offsets = [0, 1], sizes = [8, 1], strides = [1, 1]} : vector<8x4xf32> to vector<8x1xf32>
    %11 = vector.extract_strided_slice %2 {offsets = [1, 0], sizes = [1, 256], strides = [1, 1]} : vector<4x256xf32> to vector<1x256xf32>
    %12 = vector.broadcast %10 : vector<8x1xf32> to vector<8x256xf32>
    %13 = vector.broadcast %11 : vector<1x256xf32> to vector<8x256xf32>
    %14 = arith.mulf %12, %13 : vector<8x256xf32>
    %15 = arith.addf %9, %14 : vector<8x256xf32>
    %16 = vector.extract_strided_slice %4 {offsets = [0, 2], sizes = [8, 1], strides = [1, 1]} : vector<8x4xf32> to vector<8x1xf32>
    %17 = vector.extract_strided_slice %2 {offsets = [2, 0], sizes = [1, 256], strides = [1, 1]} : vector<4x256xf32> to vector<1x256xf32>
    %18 = vector.broadcast %16 : vector<8x1xf32> to vector<8x256xf32>
    %19 = vector.broadcast %17 : vector<1x256xf32> to vector<8x256xf32>
    %20 = arith.mulf %18, %19 : vector<8x256xf32>
    %21 = arith.addf %15, %20 : vector<8x256xf32>
    %22 = vector.extract_strided_slice %4 {offsets = [0, 3], sizes = [8, 1], strides = [1, 1]} : vector<8x4xf32> to vector<8x1xf32>
    %23 = vector.extract_strided_slice %2 {offsets = [3, 0], sizes = [1, 256], strides = [1, 1]} : vector<4x256xf32> to vector<1x256xf32>
    %24 = vector.broadcast %22 : vector<8x1xf32> to vector<8x256xf32>
    %25 = vector.broadcast %23 : vector<1x256xf32> to vector<8x256xf32>
    %26 = arith.mulf %24, %25 : vector<8x256xf32>
    %27 = arith.addf %21, %26 : vector<8x256xf32>
    %c0_4 = arith.constant 0 : index
    %c0_5 = arith.constant 0 : index
    %28 = vector.load %arg6[%c0_4, %c0_5] : memref<8x1xf32, #tpu.memory_space<vmem>>, vector<8x1xf32>
    %29 = vector.broadcast %28 : vector<8x1xf32> to vector<8x256xf32>
    %30 = arith.mulf %27, %29 : vector<8x256xf32>
    %c0_6 = arith.constant 0 : index
    %c0_7 = arith.constant 0 : index
    %31 = vector.load %arg7[%c0_6, %c0_7] : memref<8x1xf32, #tpu.memory_space<vmem>>, vector<8x1xf32>
    %32 = vector.broadcast %31 : vector<8x1xf32> to vector<8x256xf32>
    %33 = arith.addf %30, %32 : vector<8x256xf32>
    %cst = arith.constant 0.000000e+00 : f32
    %34 = vector.broadcast %cst : f32 to vector<8x256xf32>
    %35 = arith.maximumf %33, %34 : vector<8x256xf32>
    %c0_8 = arith.constant 0 : index
    %c0_9 = arith.constant 0 : index
    %c0_10 = arith.constant 0 : index
    %36 = vector.load %arg3[%c0_8, %c0_9, %c0_10] : memref<1x8x256xbf16, #tpu.memory_space<vmem>>, vector<1x8x256xbf16>
    %37 = vector.shape_cast %36 : vector<1x8x256xbf16> to vector<8x256xbf16>
    %38 = arith.extf %37 : vector<8x256xbf16> to vector<8x256xf32>
    %cst_11 = arith.constant 0.000000e+00 : f32
    %39 = vector.broadcast %cst_11 : f32 to vector<8x256xf32>
    %40 = arith.maximumf %38, %39 : vector<8x256xf32>
    %41 = tpu.concatenate %35, %40 in 0 : vector<8x256xf32>, vector<8x256xf32> -> vector<16x256xf32>
    %c0_12 = arith.constant 0 : index
    %c0_13 = arith.constant 0 : index
    %42 = vector.load %arg8[%c0_12, %c0_13] : memref<16x1xf32, #tpu.memory_space<vmem>>, vector<16x1xf32>
    %43 = vector.broadcast %42 : vector<16x1xf32> to vector<16x256xf32>
    %44 = arith.mulf %41, %43 : vector<16x256xf32>
    %cst_14 = arith.constant dense<0.000000e+00> : vector<256xf32>
    %45 = vector.multi_reduction <add>, %44, %cst_14 [0] : vector<16x256xf32> to vector<256xf32>
    %46 = vector.shape_cast %45 : vector<256xf32> to vector<1x256xf32>
    %c0_15 = arith.constant 0 : index
    %c0_16 = arith.constant 0 : index
    %47 = vector.load %arg9[%c0_15, %c0_16] : memref<1x1xf32, #tpu.memory_space<vmem>>, vector<1x1xf32>
    %48 = vector.broadcast %47 : vector<1x1xf32> to vector<1x256xf32>
    %49 = arith.addf %46, %48 : vector<1x256xf32>
    %50 = arith.negf %49 : vector<1x256xf32>
    %51 = math.exp %50 : vector<1x256xf32>
    %cst_17 = arith.constant 1.000000e+00 : f32
    %52 = vector.broadcast %cst_17 : f32 to vector<1x256xf32>
    %53 = arith.addf %52, %51 : vector<1x256xf32>
    %54 = arith.divf %52, %53 : vector<1x256xf32>
    %c0_18 = arith.constant 0 : index
    %c0_19 = arith.constant 0 : index
    %c0_20 = arith.constant 0 : index
    %55 = vector.load %arg10[%c0_18, %c0_19, %c0_20] : memref<1x1x256xf32, #tpu.memory_space<vmem>>, vector<1x1x256xf32>
    %56 = vector.shape_cast %55 : vector<1x1x256xf32> to vector<1x256xf32>
    %57 = vector.shape_cast %54 : vector<1x256xf32> to vector<1x1x256xf32>
    tpu.vector_store %arg10[%c0_18, %c0_19, %c0_20], %57 {strides = array<i32>} : memref<1x1x256xf32, #tpu.memory_space<vmem>>, vector<1x1x256xf32>,
    %c0_21 = arith.constant 0 : index
    %c0_22 = arith.constant 0 : index
    %58 = vector.load %arg4[%c0_21, %c0_22] : memref<16x256xf32, #tpu.memory_space<vmem>>, vector<16x256xf32>
    %cst_23 = arith.constant dense<0.000000e+00> : vector<16x16xf32>
    %59 = tpu.matmul %41, %58, %cst_23 {dimension_numbers = #tpu.dot_dimension_numbers<[1], [1], [0], [0], [0, 0, 1, 0], [], []>} : vector<16x256xf32>, vector<16x256xf32>, vector<16x16xf32> -> vector<16x16xf32>
    %cst_24 = arith.constant 6.250000e-02 : f32
    %60 = vector.broadcast %cst_24 : f32 to vector<16x16xf32>
    %61 = arith.mulf %59, %60 : vector<16x16xf32>
    %c0_25 = arith.constant 0 : index
    %c0_26 = arith.constant 0 : index
    %c0_27 = arith.constant 0 : index
    %c0_28 = arith.constant 0 : index
    %62 = vector.load %arg11[%c0_25, %c0_26, %c0_27, %c0_28] : memref<1x1x16x16xf32, #tpu.memory_space<vmem>>, vector<1x1x16x16xf32>
    %63 = vector.shape_cast %62 : vector<1x1x16x16xf32> to vector<16x16xf32>
    %64 = vector.shape_cast %61 : vector<16x16xf32> to vector<1x1x16x16xf32>
    tpu.vector_store %arg11[%c0_25, %c0_26, %c0_27, %c0_28], %64 {strides = array<i32>} : memref<1x1x16x16xf32, #tpu.memory_space<vmem>>, vector<1x1x16x16xf32>,
    return
  }
  func.func @transform_0(%arg0: i32, %arg1: i32) -> (i32, i32, i32) {
    %c0_i32 = arith.constant 0 : i32
    %c0_i32_0 = arith.constant 0 : i32
    return %arg0, %c0_i32, %arg1 : i32, i32, i32
  }
  func.func @transform_1(%arg0: i32, %arg1: i32) -> (i32, i32, i32) {
    %c0_i32 = arith.constant 0 : i32
    %c0_i32_0 = arith.constant 0 : i32
    return %arg0, %c0_i32, %arg1 : i32, i32, i32
  }
  func.func @transform_2(%arg0: i32, %arg1: i32) -> (i32, i32) {
    %c0_i32 = arith.constant 0 : i32
    %c0_i32_0 = arith.constant 0 : i32
    %c0_i32_1 = arith.constant 0 : i32
    return %c0_i32, %c0_i32_0 : i32, i32
  }
  func.func @transform_3(%arg0: i32, %arg1: i32) -> (i32, i32) {
    %c0_i32 = arith.constant 0 : i32
    %c0_i32_0 = arith.constant 0 : i32
    %c0_i32_1 = arith.constant 0 : i32
    return %c0_i32, %c0_i32_0 : i32, i32
  }
  func.func @transform_4(%arg0: i32, %arg1: i32) -> (i32, i32) {
    %c0_i32 = arith.constant 0 : i32
    %c0_i32_0 = arith.constant 0 : i32
    %c0_i32_1 = arith.constant 0 : i32
    return %c0_i32, %c0_i32_0 : i32, i32
  }
  func.func @transform_5(%arg0: i32, %arg1: i32) -> (i32, i32) {
    %c0_i32 = arith.constant 0 : i32
    %c0_i32_0 = arith.constant 0 : i32
    %c0_i32_1 = arith.constant 0 : i32
    return %c0_i32, %c0_i32_0 : i32, i32
  }
  func.func @transform_6(%arg0: i32, %arg1: i32) -> (i32, i32) {
    %c0_i32 = arith.constant 0 : i32
    %c0_i32_0 = arith.constant 0 : i32
    %c0_i32_1 = arith.constant 0 : i32
    return %c0_i32, %c0_i32_0 : i32, i32
  }
  func.func @transform_7(%arg0: i32, %arg1: i32) -> (i32, i32) {
    %c0_i32 = arith.constant 0 : i32
    %c0_i32_0 = arith.constant 0 : i32
    %c0_i32_1 = arith.constant 0 : i32
    return %c0_i32, %c0_i32_0 : i32, i32
  }
  func.func @transform_8(%arg0: i32, %arg1: i32) -> (i32, i32, i32) {
    %c0_i32 = arith.constant 0 : i32
    %c0_i32_0 = arith.constant 0 : i32
    return %arg0, %c0_i32, %arg1 : i32, i32, i32
  }
  func.func @transform_9(%arg0: i32, %arg1: i32) -> (i32, i32, i32, i32) {
    %c0_i32 = arith.constant 0 : i32
    %c0_i32_0 = arith.constant 0 : i32
    %c0_i32_1 = arith.constant 0 : i32
    return %arg0, %arg1, %c0_i32, %c0_i32_0 : i32, i32, i32, i32
  }
}

</mosaic_0001>

<bundles_post_ra>
// kernel: attention_block_forward.1
= control target key start
LH: loop header
LB: loop body
LE: loop exit
PB: predicated region body
PF: predicated region fallthrough
CT: control target
= control target key end

     0   :  { %s1025_s11 = smov 0   ;;  %s1027_s12 = smov 0   ;;  %s1124_s0 = inlined_call_operand.vmem [shape: bf16[2,4,256], index: 0, kind: input, shape index: {}]   ;;  %s1125_s1 = inlined_call_operand.vmem [shape: bf16[2,8,256], index: 1, kind: input, shape index: {}]   ;;  %s1126_s2 = inlined_call_operand.vmem [shape: f32[16,256], index: 2, kind: input, shape index: {}]   ;;  %s1127_s3 = inlined_call_operand.vmem [shape: bf16[8,4], index: 3, kind: input, shape index: {}]   ;;  %s1128_s4 = inlined_call_operand.vmem [shape: f32[8,1], index: 4, kind: input, shape index: {}]   ;;  %s1129_s5 = inlined_call_operand.vmem [shape: f32[8,1], index: 5, kind: input, shape index: {}]   ;;  %s1130_s6 = inlined_call_operand.vmem [shape: f32[16,1], index: 6, kind: input, shape index: {}]   ;;  %s1131_s7 = inlined_call_operand.<no memory space> [shape: f32[1,1], index: 7, kind: input, shape index: {}]   ;;  %s1132_s8 = inlined_call_operand.vmem [shape: f32[2,1,256], index: 8, kind: output, shape index: {0}]   ;;  %s1133_s9 = inlined_call_operand.vmem [shape: f32[2,1,16,16], index: 9, kind: output, shape index: {1}]  }
   0x1   :  { %v15_v0 = vstv %s1131_s7  ;;  %s1029_s13 = smov 0  }
   0x2   :  { %16 = vst [vmem:[#allocation2] sm:$0x1] %v15_v0 }
   0x3 LB: > { %s34_s7 = sadd.s32 1, %s961_s12  ;;  %p879_p0 = scmp.ge.s32.totalorder %s965_s13, 1  ;;  %s965_s13 = sphi %s1029_s13, %s22_s13   ;;  %s961_s12 = sphi %s1027_s12, %s1135_s12   ;;  %s957_s11 = sphi %s1025_s11, %s1134_s11  }
   0x4   : > { %p36_p1 = scmp.ge.s32.totalorder %s34_s7, 2  ;;  %p332_p2 = scmp.lt.s32.totalorder %s965_s13, 3 }
   0x6   : > { %s1137_s7 = smov (%p36_p1, %s34_s7), 0  ;;  %p333_p3 = pnand %p879_p0, %p332_p2 }
   0x7   : > { %v433_v1 = vld [vmem:[%s1127_s3] sm:$0xf] (!%p333_p3)  ;;  %v967_v2 = vmov (!%p333_p3), 2   ;;  %v968_v3 = vmov (!%p333_p3), 0   ;;  %v969_v5 = vmov (!%p333_p3), 3   ;;  %v970_v6 = vmov (!%p333_p3), 1  }
   0x8   : > { %336 = sbr.rel (%p333_p3) target bundleno = 373 (0x175), region = 52  ;;  %931 = vset.pattern.permute.xlu1 (!%p333_p3), %v967_v2  ;;  %929 = vset.pattern.permute.xlu0 (!%p333_p3), %v968_v3  ;;  %v434_v4 = vunpack.c.l.bf16 (!%p333_p3), %v433_v1  ;;  %p394_p4 = scmp.lt.s32.totalorder (!%p333_p3), %s957_s11, 1  ;;  %v539_v7 = vld [vmem:[%s1128_s4] sm:$0xff] (!%p333_p3)  ;;  %v640_v9 = vld [vmem:[%s1126_s2 + $0x8] sm:$0xff] (!%p333_p3)  ;;  %v642_v10 = vld [vmem:[%s1126_s2 + $0x18] sm:$0xff] (!%p333_p3)  ;;  %v441_v23 = vlaneseq (!%p333_p3)  ;;  %vm720_vm1 = vcmask (!%p333_p3), 130048  }
   0x9   : > { %v547_v8 = vld [vmem:[%s1129_s5] sm:$0xff] (!%p333_p3)  ;;  %v641_v12 = vld [vmem:[%s1126_s2 + $0x10] sm:$0xff] (!%p333_p3)  ;;  %v894_v15 = vpack.c.bf16 (!%p333_p3), %v642_v10, %v640_v9  ;;  %v563_v20 = vld [vmem:[%s1130_s6 + $0x8] sm:$0xff] (!%p333_p3) }
   0xa   : > { %488 = vperm.xlu1 (!%p333_p3), %931, %v434_v4   ;;  %437 = vperm.xlu0 (!%p333_p3), %929, %v434_v4   ;;  %v639_v11 = vld [vmem:[%s1126_s2] sm:$0xff] (!%p333_p3)  ;;  %v1088_v24 = vshrl.u32 (!%p333_p3), %v441_v23, 7  ;;  %vm636_vm0 = vcmp.lt.s32.totalorder (!%p333_p3), %v441_v23, 256 }
   0xb   : > { %v562_v13 = vld [vmem:[%s1130_s6] sm:$0xff] (!%p333_p3)  ;;  %v896_v16 = vpack.c.bf16 (!%p333_p3), %v641_v12, %v639_v11  ;;  %898 = vmatprep.subr.bf16.mxu1 (!%p333_p3), %v894_v15  ;;  %895 = vmatprep.subr.bf16.mxu0 (!%p333_p3), %v894_v15 }
   0xc   : > { %v592_v14 = vld [vmem:[#allocation2] sm:$0x1] (!%p333_p3)  ;;  %v1091_v26 = vsub.s32 (!%p333_p3), 0, %v1088_v24  ;;  %v447_v27 = vsub.s32 (!%p333_p3), 4, %v1088_v24  ;;  %v467_v29 = vsub.s32 (!%p333_p3), 1, %v1088_v24  ;;  %v471_v30 = vsub.s32 (!%p333_p3), 5, %v1088_v24 }
   0xd   : > { %899 = vmatpush1.bf16.xpose.msra.mxu1 (!%p333_p3), %v896_v16  ;;  %897 = vmatpush1.bf16.xpose.msra.mxu0 (!%p333_p3), %v896_v16  ;;  %v493_v31 = vsub.s32 (!%p333_p3), 2, %v1088_v24  ;;  %v497_v32 = vsub.s32 (!%p333_p3), 6, %v1088_v24  ;;  %v519_v33 = vsub.s32 (!%p333_p3), 3, %v1088_v24  ;;  %v523_v34 = vsub.s32 (!%p333_p3), 7, %v1088_v24 }
   0xe   : > { %932 = vset.pattern.permute.xlu1 (!%p333_p3), %v969_v5  ;;  %930 = vset.pattern.permute.xlu0 (!%p333_p3), %v970_v6 }
   0xf   : > { %514 = vperm.xlu1 %932, %v434_v4   ;;  %462 = vperm.xlu0 %930, %v434_v4   ;;  %s1139_s11 = smov (!%p394_p4, %s957_s11), 1 }
  0x10   : > { %s892_s30 = sshll.u32 %s1139_s11, 3  ;;  %s891_s18 = sshll.u32 %s1139_s11, 2 }
  0x11   : > { %s411_s15 = scalar_lea.vmem %s1125_s1, %s892_s30  ;;  %s401_s21 = scalar_lea.vmem %s1124_s0, %s891_s18 }
  0x12   : > { %v557_v17 = vld [vmem:[%s411_s15] sm:$0xff]  ;;  %s884_s22 = sshll.u32 %s1139_s11, 1  ;;  %s893_s26 = sshll.u32 %s1139_s11, 4 }
  0x13   : > { %933 = vset.pattern.permute.xlu1 %v968_v3  ;;  %934 = vset.pattern.permute.xlu0 %v968_v3  ;;  %v558_v18 = vunpack.c.l.bf16 %v557_v17  ;;  %v559_v19 = vunpack.c.h.bf16 %v557_v17  ;;  %v431_v25 = vld [vmem:[%s401_s21] sm:$0xf]  ;;  %s420_s25 = scalar_lea.vmem %s1132_s8, %s884_s22  ;;  %s430_s29 = scalar_lea.vmem %s1133_s9, %s893_s26 }
  0x14   : > { %542 = vperm.xlu1 %933, %v539_v7   ;;  %550 = vperm.xlu0 %934, %v547_v8   ;;  %v432_v28 = vunpack.c.l.bf16 %v431_v25 }
  0x15   : > { %v1080_v21 = vmax.f32 %v559_v19, 0.0  ;;  %v560_v22 = vmax.f32 %v558_v18, 0.0 }
  0x16   : > { %v444_v35 = vrot.slane %v432_v28, %v1091_v26  ;;  %v448_v36 = vrot.slane %v432_v28, %v447_v27  ;;  %v468_v37 = vrot.slane %v432_v28, %v467_v29  ;;  %v472_v38 = vrot.slane %v432_v28, %v471_v30 }
  0x17   : > { %712 = vmatprep.mubr.f32.mxu1 %v1080_v21  ;;  %v494_v39 = vrot.slane %v432_v28, %v493_v31  ;;  %v498_v40 = vrot.slane %v432_v28, %v497_v32  ;;  %v520_v43 = vrot.slane %v432_v28, %v519_v33  ;;  %v524_v44 = vrot.slane %v432_v28, %v523_v34 }
  0x18   : > { %566 = vperm.xlu1 %933, %v562_v13   ;;  %595 = vperm.xlu0 %934, %v592_v14   ;;  %v454_v45 = vrot.slane %v444_v35, %v1091_v26  ;;  %v458_v46 = vrot.slane %v448_v36, %v1091_v26  ;;  %v478_v47 = vrot.slane %v468_v37, %v467_v29 }
  0x19   : > { %713 = vmatmul.mubr.f32.vlgmr.msra.gmra.mrb[0].mxu1 %v560_v22  ;;  %v482_v48 = vrot.slane %v472_v38, %v467_v29  ;;  %v504_v49 = vrot.slane %v494_v39, %v493_v31  ;;  %v508_v50 = vrot.slane %v498_v40, %v493_v31  ;;  %v530_v51 = vrot.slane %v520_v43, %v519_v33 }
  0x1a   : > { %v534_v52 = vrot.slane %v524_v44, %v519_v33 }
  0x1c   : > { %571 = vperm.xlu1 %933, %v563_v20  }
  0x89   : > { %v438_v41 = vpop.permute.xlu0 %437  ;;  %v489_v42 = vpop.permute.xlu1 %488 }
  0x8a   : > { %v459_v55 = vmul.f32 %v454_v45, %v438_v41  ;;  %v460_v56 = vmul.f32 %v458_v46, %v438_v41  ;;  %v509_v59 = vmul.f32 %v504_v49, %v489_v42  ;;  %v510_v60 = vmul.f32 %v508_v50, %v489_v42 }
  0x8b   : > { %v971_v46 = vmov 1966171168  }
  0x8e   : > { %v463_v53 = vpop.permute.xlu0 %462  ;;  %v515_v54 = vpop.permute.xlu1 %514 }
  0x8f   : > { %v483_v57 = vmul.f32 %v478_v47, %v463_v53  ;;  %v484_v58 = vmul.f32 %v482_v48, %v463_v53  ;;  %v535_v63 = vmul.f32 %v530_v51, %v515_v54  ;;  %v536_v0 = vmul.f32 %v534_v52, %v515_v54 }
  0x90   : > { %v620_v47 = vunpack.c.l.s4 %v971_v46 }
  0x91   : > { %v485_v61 = vadd.f32 %v483_v57, %v459_v55  ;;  %v486_v62 = vadd.f32 %v484_v58, %v460_v56 }
  0x92   : > { %v621_v48 = vunpack.c.0.s8 %v620_v47 }
  0x93   : > { %v543_v1 = vpop.permute.xlu1 %542  ;;  %v511_v2 = vadd.f32 %v509_v59, %v485_v61  ;;  %v512_v3 = vadd.f32 %v510_v60, %v486_v62  ;;  %v551_v9 = vpop.permute.xlu0 %550 }
  0x94   : > { %v624_v49 = vsub.s32 %v621_v48, %v1088_v24 }
  0x95   : > { %v537_v4 = vadd.f32 %v535_v63, %v511_v2  ;;  %v538_v5 = vadd.f32 %v536_v0, %v512_v3 }
  0x97   : > { %v545_v6 = vmul.f32 %v543_v1, %v537_v4  ;;  %v546_v7 = vmul.f32 %v543_v1, %v538_v5  ;;  %v567_v8 = vpop.permute.xlu1 %566  ;;  %v596_v34 = vpop.permute.xlu0 %595 }
  0x99   : > { %v553_v10 = vadd.f32 %v551_v9, %v545_v6  ;;  %v554_v11 = vadd.f32 %v551_v9, %v546_v7 }
  0x9b   : > { %v555_v12 = vmax.f32 %v553_v10, 0.0  ;;  %v572_v13 = vpop.permute.xlu1 %571  ;;  %v556_v14 = vmax.f32 %v554_v11, 0.0 }
  0x9c   : > { %v576_v15 = vmul.f32 %v572_v13, %v560_v22  ;;  %v577_v16 = vmul.f32 %v572_v13, %v1080_v21  ;;  %v601_v22 = vrot.slane %v596_v34, %v1091_v26 }
  0x9d   : > { %v574_v17 = vmul.f32 %v567_v8, %v555_v12  ;;  %v575_v18 = vmul.f32 %v567_v8, %v556_v14  ;;  %707 = vmatprep.mubr.f32.mxu0 %v556_v14 }
  0x9e   : > { %708 = vmatmul.mubr.f32.vlgmr.msra.gmra.mrb[0].mxu0 %v555_v12 }
  0x9f   : > { %v578_v19 = vadd.f32 %v576_v15, %v574_v17  ;;  %v585_v20 = vadd.f32 %v577_v16, %v575_v18 }
  0xa1   : > { %v579_v25 = vrot.slane %v578_v19, 4  ;;  %v586_v27 = vrot.slane %v585_v20, 4 }
  0xa3   : > { %v580_v28 = vadd.f32 %v579_v25, %v578_v19  ;;  %v587_v29 = vadd.f32 %v586_v27, %v585_v20 }
  0xa5   : > { %v581_v30 = vrot.slane %v580_v28, 2  ;;  %v588_v31 = vrot.slane %v587_v29, 2 }
  0xa7   : > { %v582_v32 = vadd.f32 %v581_v30, %v580_v28  ;;  %v589_v33 = vadd.f32 %v588_v31, %v587_v29 }
  0xa9   : > { %v583_v35 = vrot.slane %v582_v32, 1  ;;  %v590_v36 = vrot.slane %v589_v33, 1 }
  0xab   : > { %v584_v21 = vadd.f32 %v583_v35, %v582_v32  ;;  %v591_v37 = vadd.f32 %v590_v36, %v589_v33 }
  0xad   : > { %v602_v38 = vadd.f32 %v601_v22, %v584_v21  ;;  %v603_v39 = vadd.f32 %v601_v22, %v591_v37 }
  0xaf   : > { %v887_v40 = vmul.f32 -1.442695, %v602_v38  ;;  %v888_v41 = vmul.f32 -1.442695, %v603_v39 }
  0xb1   : > { %935 = vpow2.f32 %v887_v40 }
  0xb2   : > { %937 = vpow2.f32 %v888_v41 }
  0xbb   : > { %v936_v42 = vpop.eup %935 }
  0xbc   : > { %v938_v43 = vpop.eup %937  ;;  %v610_v44 = vadd.f32 1.0, %v936_v42 }
  0xbd   : > { %v611_v45 = vadd.f32 1.0, %v938_v43 }
  0xbe   : > { %939 = vrcp.f32 %v610_v44 }
  0xbf   : > { %941 = vrcp.f32 %v611_v45 }
  0xc8   : > { %v940_v26 = vpop.eup %939 }
  0xc9   : > { %v942_v50 = vpop.eup %941 }
  0xca   : > { %v618_v51 = vcombine.low %v940_v26, %v942_v50 }
  0xcc   : > { %v625_v52 = vrot.slane %v618_v51, %v624_v49 }
  0xce   : > { %v632_v53 = vrot.slane %v625_v52, %v624_v49 }
  0xd0   : > { %638 = vst.msk [vmem:[%s420_s25] sm:$0x3] %vm636_vm0, %v632_v53 }
  0xec   : > { %v714_v54 = vpop.f32.mrb[0].mxu1 }
  0xed   : > { %v719_v24 = vmul.f32 0.0625, %v714_v54  ;;  %v716_v55 = vpop.f32.mrb[1].mxu1 }
  0xef   : > { %722 = vst.msk [vmem:[%s430_s29 + $0x8] sm:$0xff] %vm720_vm1, %v719_v24 }
 0x171   : > { %v709_v56 = vpop.f32.mrb[0].mxu0 }
 0x172   : > { %v718_v57 = vmul.f32 0.0625, %v709_v56  ;;  %v711_v58 = vpop.f32.mrb[1].mxu0 }
 0x174   : > { %721 = vst.msk [vmem:[%s430_s29] sm:$0xff] %vm720_vm1, %v718_v57 }
 0x175 PF: > { %s22_s13 = sadd.s32 1, %s965_s13   ;;  %s1134_s11 = smov %s961_s12 }
 0x176   : > { %p19_p5 = scmp.ge.s32.totalorder %s22_s13, 4   ;;  %s1135_s12 = smov %s1137_s7 }
 0x178   :  { %21 = sbr.rel (!%p19_p5) target bundleno = 3 (0x3), region = 97 }

</bundles_post_ra>
